<compile_context>
chip_gen: v7x
topology: tpu7x:2x2x1
jax: 0.10.0
libtpu: 0.0.40
codegen_flags: <defaults>
</compile_context>

<pallas_src>
import functools

import jax
import jax.numpy as jnp
from jax.experimental import pallas as pl
from jax.experimental.pallas import tpu as pltpu

EMBED_DIM = 128
HIDDEN = 64
OUT = 10
LANE = 128          # lane-dense padded width for the hidden layer
NORM_EPS = 1e-12    # matches F.normalize default


def _round_up(x, m):
    return ((x + m - 1) // m) * m


def _text_encoder_kernel(tok_ref, w1f_ref, b1_ref, w2_ref, b2_ref, o_ref, *, vocab_size):
    # tok_ref : (TB, S)   int32  raw token ids
    # w1f_ref : (Vp, 128) f32    (embedding @ fc1_w) / S, hidden padded 64 -> 128 with zeros
    # b1_ref  : (1, 128)  f32    fc1 bias (cols >= 64 are zero)
    # w2_ref  : (128, 10) f32    fc2 weight (rows >= 64 are zero)
    # b2_ref  : (1, 10)   f32
    # o_ref   : (TB, 10)  f32    L2-normalized output
    tok = tok_ref[...]                                   # (TB, S)
    TB, S = tok.shape
    Vp = w1f_ref.shape[0]

    # Lane-dense per-row token histogram: for each vocab id v, compare the (TB, S) token tile
    # (S on the lane axis -> full-lane VPU work for long sequences) and lane-reduce (XLU) into
    # counts[:, v].  counts are exact in f32 for any realistic S (< 2^24 hits per row).
    # NOTE: out-of-range / negative token ids contribute nothing (nn.Embedding would raise);
    # inputs are assumed to lie in [0, vocab_size).
    lane_ids = jax.lax.broadcasted_iota(jnp.int32, (1, Vp), 1)            # (1, Vp)
    counts = jnp.zeros((TB, Vp), jnp.float32)
    for v in range(vocab_size):                                           # V ~ 15, fully unrolled
        hit = (tok == v).astype(jnp.float32)                              # (TB, S)   VPU compare
        cnt_v = jnp.sum(hit, axis=-1, keepdims=True)                      # (TB, 1)   XLU reduce
        counts = counts + cnt_v * (lane_ids == v).astype(jnp.float32)     # place into lane v

    # mean(emb[tok]) @ W1 + b1  ==  counts @ ((emb @ W1) / S) + b1   (fold done on host)
    h = jnp.dot(counts, w1f_ref[...], preferred_element_type=jnp.float32) + b1_ref[...]
    h = jnp.maximum(h, 0.0)                                               # (TB, 128), cols>=64 stay 0

    y = jnp.dot(h, w2_ref[...], preferred_element_type=jnp.float32) + b2_ref[...]   # (TB, 10)

    # F.normalize(y, dim=-1): rsqrt on the EUP; sqrt is monotone so the eps clamp is equivalent.
    ss = jnp.sum(y * y, axis=-1, keepdims=True)
    o_ref[...] = y * jax.lax.rsqrt(jnp.maximum(ss, NORM_EPS * NORM_EPS))


def _pick_batch_tile(B):
    """Batch tile: large (<=2048 rows) to amortize the ~0.35us/step grid overhead, >= 2 tiles
    when B allows it (keeps both v7x TensorCores busy), multiple of 8, preferring exact divisors
    of the 8-padded batch so the token tensor needs no host-side copy-pad."""
    Bp8 = max(8, _round_up(B, 8))
    if Bp8 <= 16:
        return Bp8                       # single tiny tile for small B
    cap = max(8, min(2048, (Bp8 // 2) // 8 * 8))
    t = cap
    while t >= max(8, cap // 2):
        if Bp8 % t == 0:
            return t
        t -= 8
    return cap                           # no nice divisor: accept a ragged, zero-padded last tile


def text_encoder_forward(tokens, embedding, w1, b1, w2, b2, *, tb=None):
    """tokens: (B, S) int; embedding: (V, 128); w1: (128, 64); b1: (1, 64) or (64,);
    w2: (64, 10); b2: (1, 10) or (10,).  Returns (B, 10) f32."""
    B, S = tokens.shape
    V, D = embedding.shape
    assert D == EMBED_DIM

    # --- host-side, one-time parameter prep (zero padding is exact) ---
    # Fold the embedding table and the 1/S of the mean into fc1:
    #   mean(emb[tok]) @ w1 = (counts / S) @ emb @ w1 = counts @ ((emb @ w1) / S)
    Vp = max(8, _round_up(V, 8))
    w1f = (embedding.astype(jnp.float32) @ w1.astype(jnp.float32)) * (1.0 / S)     # (V, 64)
    w1f_p = jnp.zeros((Vp, LANE), jnp.float32).at[:V, :HIDDEN].set(w1f)
    b1_p = jnp.zeros((1, LANE), jnp.float32).at[:, :HIDDEN].set(
        b1.astype(jnp.float32).reshape(1, HIDDEN))
    w2_p = jnp.zeros((LANE, OUT), jnp.float32).at[:HIDDEN, :].set(w2.astype(jnp.float32))
    b2_p = b2.astype(jnp.float32).reshape(1, OUT)

    # --- batch tiling ---
    if tb is None:
        tb = _pick_batch_tile(B)
    Bp = _round_up(B, tb)
    tok_i = tokens.astype(jnp.int32)
    if Bp != B:                          # copy-pad only when unavoidable
        tok_i = jnp.zeros((Bp, S), jnp.int32).at[:B, :].set(tok_i)
    nb = Bp // tb

    param_bytes = 4 * (Vp * LANE + LANE + LANE * OUT + OUT)
    cost = pl.CostEstimate(
        flops=int(2 * Bp * Vp * LANE + 2 * Bp * LANE * OUT + Bp * S * V),
        transcendentals=int(Bp),
        bytes_accessed=int(4 * Bp * S + 4 * Bp * OUT + param_bytes),
    )

    kernel = functools.partial(_text_encoder_kernel, vocab_size=V)

    out = pl.pallas_call(
        kernel,
        out_shape=jax.ShapeDtypeStruct((Bp, OUT), jnp.float32),
        grid_spec=pltpu.PrefetchScalarGridSpec(
            num_scalar_prefetch=0,
            grid=(nb,),
            in_specs=[
                pl.BlockSpec((tb, S), lambda i: (i, 0)),       # tokens: tiled over batch
                pl.BlockSpec((Vp, LANE), lambda i: (0, 0)),    # folded (emb @ fc1)/S, resident
                pl.BlockSpec((1, LANE), lambda i: (0, 0)),     # fc1 bias (padded)
                pl.BlockSpec((LANE, OUT), lambda i: (0, 0)),   # fc2 weight (rows padded)
                pl.BlockSpec((1, OUT), lambda i: (0, 0)),      # fc2 bias
            ],
            out_specs=pl.BlockSpec((tb, OUT), lambda i: (i, 0)),   # only the 10 real cols hit HBM
        ),
        compiler_params=pltpu.CompilerParams(
            dimension_semantics=("parallel",),     # shard batch tiles across TCs on v7x
            vmem_limit_bytes=32 * 1024 * 1024,     # working set is ~2-3 MiB even at tb=2048
        ),
        cost_estimate=cost,
    )(tok_i, w1f_p, b1_p, w2_p, b2_p)

    return out if Bp == B else out[:B]


def reference_forward(tokens, embedding, w1, b1, w2, b2):
    emb = jnp.take(embedding, tokens, axis=0)                 # (B, S, 128)
    m = jnp.mean(emb, axis=1)                                 # (B, 128)
    h = jnp.maximum(m @ w1 + b1.reshape(1, -1), 0.0)          # (B, 64)
    y = h @ w2 + b2.reshape(1, -1)                            # (B, 10)
    n = jnp.sqrt(jnp.sum(y * y, axis=-1, keepdims=True))
    return y / jnp.maximum(n, NORM_EPS)


if __name__ == "__main__":
    # vocab = sorted(set("".join(["zero","one",...,"nine"]))) -> 15 chars
    chars = sorted(set("".join(
        ["zero", "one", "two", "three", "four", "five",
         "six", "seven", "eight", "nine"])))
    vocab_size = len(chars)  # 15

    key = jax.random.PRNGKey(0)
    k_emb, k_w1, k_b1, k_w2, k_b2, k_tok1, k_tok2 = jax.random.split(key, 7)

    # Deterministic parameter init (shapes match nn.Embedding / nn.Linear of the module,
    # with Linear weights stored transposed so the kernel computes y = x @ W + b).
    embedding = jax.random.normal(k_emb, (vocab_size, EMBED_DIM), dtype=jnp.float32)
    lim1 = 1.0 / jnp.sqrt(EMBED_DIM)
    w1 = jax.random.uniform(k_w1, (EMBED_DIM, HIDDEN), minval=-lim1, maxval=lim1, dtype=jnp.float32)
    b1 = jax.random.uniform(k_b1, (1, HIDDEN), minval=-lim1, maxval=lim1, dtype=jnp.float32)
    lim2 = 1.0 / jnp.sqrt(HIDDEN)
    w2 = jax.random.uniform(k_w2, (HIDDEN, OUT), minval=-lim2, maxval=lim2, dtype=jnp.float32)
    b2 = jax.random.uniform(k_b2, (1, OUT), minval=-lim2, maxval=lim2, dtype=jnp.float32)

    # Case 1: small example input, batch=2, seq=8 (single tile).
    tokens = jax.random.randint(k_tok1, (2, 8), 0, vocab_size, dtype=jnp.int32)
    out = jax.block_until_ready(text_encoder_forward(tokens, embedding, w1, b1, w2, b2))
    ref = reference_forward(tokens, embedding, w1, b1, w2, b2)
    assert out.shape == (2, OUT)
    assert jnp.allclose(out, ref, atol=1e-5, rtol=1e-5)

    # Case 2: moderate batch=37, seq=12 (multi-tile grid + ragged last tile path).
    tokens2 = jax.random.randint(k_tok2, (37, 12), 0, vocab_size, dtype=jnp.int32)
    out2 = jax.block_until_ready(text_encoder_forward(tokens2, embedding, w1, b1, w2, b2))
    ref2 = reference_forward(tokens2, embedding, w1, b1, w2, b2)
    assert out2.shape == (37, OUT)
    assert jnp.allclose(out2, ref2, atol=1e-5, rtol=1e-5)

    print("KERNEL_OK")
</pallas_src>

<mosaic_0001>
module attributes {stable_mosaic.version = 11 : i64} {
  func.func @_text_encoder_kernel(%arg0: i32, %arg1: memref<8x8xi32, #tpu.memory_space<vmem>>, %arg2: memref<16x128xf32, #tpu.memory_space<vmem>>, %arg3: memref<1x128xf32, #tpu.memory_space<vmem>>, %arg4: memref<128x10xf32, #tpu.memory_space<vmem>>, %arg5: memref<1x10xf32, #tpu.memory_space<vmem>>, %arg6: memref<8x10xf32, #tpu.memory_space<vmem>>) attributes {dimension_semantics = [#tpu.dimension_semantics<parallel>], iteration_bounds = array<i64: 1>, scalar_prefetch = 0 : i64, scratch_operands = 0 : i64, tpu.core_type = #tpu.core_type<tc>, window_params = [{transform_indices = @transform_0, window_bounds = array<i64: 8, 8>}, {pipeline_mode = #tpu.pipeline_mode<synchronous>, transform_indices = @transform_1, window_bounds = array<i64: 16, 128>}, {pipeline_mode = #tpu.pipeline_mode<synchronous>, transform_indices = @transform_2, window_bounds = array<i64: 1, 128>}, {pipeline_mode = #tpu.pipeline_mode<synchronous>, transform_indices = @transform_3, window_bounds = array<i64: 128, 10>}, {pipeline_mode = #tpu.pipeline_mode<synchronous>, transform_indices = @transform_4, window_bounds = array<i64: 1, 10>}, {transform_indices = @transform_5, window_bounds = array<i64: 8, 10>}]} {
    %c0 = arith.constant 0 : index
    %c0_0 = arith.constant 0 : index
    %0 = vector.load %arg1[%c0, %c0_0] : memref<8x8xi32, #tpu.memory_space<vmem>>, vector<8x8xi32>
    %1 = tpu.iota {dimensions = array<i32: 1>} : vector<1x16xi32>
    %cst = arith.constant 0.000000e+00 : f32
    %2 = vector.broadcast %cst : f32 to vector<8x16xf32>
    %c0_i32 = arith.constant 0 : i32
    %3 = vector.broadcast %c0_i32 : i32 to vector<8x8xi32>
    %4 = arith.cmpi eq, %0, %3 : vector<8x8xi32>
    %5 = arith.extui %4 : vector<8x8xi1> to vector<8x8xi32>
    %6 = arith.sitofp %5 : vector<8x8xi32> to vector<8x8xf32>
    %cst_1 = arith.constant dense<0.000000e+00> : vector<8xf32>
    %7 = vector.multi_reduction <add>, %6, %cst_1 [1] : vector<8x8xf32> to vector<8xf32>
    %8 = vector.shape_cast %7 : vector<8xf32> to vector<8x1xf32>
    %c0_i32_2 = arith.constant 0 : i32
    %9 = vector.broadcast %c0_i32_2 : i32 to vector<1x16xi32>
    %10 = arith.cmpi eq, %1, %9 : vector<1x16xi32>
    %11 = arith.extui %10 : vector<1x16xi1> to vector<1x16xi32>
    %12 = arith.sitofp %11 : vector<1x16xi32> to vector<1x16xf32>
    %13 = vector.broadcast %8 : vector<8x1xf32> to vector<8x16xf32>
    %14 = vector.broadcast %12 : vector<1x16xf32> to vector<8x16xf32>
    %15 = arith.mulf %13, %14 : vector<8x16xf32>
    %16 = arith.addf %2, %15 : vector<8x16xf32>
    %c1_i32 = arith.constant 1 : i32
    %17 = vector.broadcast %c1_i32 : i32 to vector<8x8xi32>
    %18 = arith.cmpi eq, %0, %17 : vector<8x8xi32>
    %19 = arith.extui %18 : vector<8x8xi1> to vector<8x8xi32>
    %20 = arith.sitofp %19 : vector<8x8xi32> to vector<8x8xf32>
    %cst_3 = arith.constant dense<0.000000e+00> : vector<8xf32>
    %21 = vector.multi_reduction <add>, %20, %cst_3 [1] : vector<8x8xf32> to vector<8xf32>
    %22 = vector.shape_cast %21 : vector<8xf32> to vector<8x1xf32>
    %c1_i32_4 = arith.constant 1 : i32
    %23 = vector.broadcast %c1_i32_4 : i32 to vector<1x16xi32>
    %24 = arith.cmpi eq, %1, %23 : vector<1x16xi32>
    %25 = arith.extui %24 : vector<1x16xi1> to vector<1x16xi32>
    %26 = arith.sitofp %25 : vector<1x16xi32> to vector<1x16xf32>
    %27 = vector.broadcast %22 : vector<8x1xf32> to vector<8x16xf32>
    %28 = vector.broadcast %26 : vector<1x16xf32> to vector<8x16xf32>
    %29 = arith.mulf %27, %28 : vector<8x16xf32>
    %30 = arith.addf %16, %29 : vector<8x16xf32>
    %c2_i32 = arith.constant 2 : i32
    %31 = vector.broadcast %c2_i32 : i32 to vector<8x8xi32>
    %32 = arith.cmpi eq, %0, %31 : vector<8x8xi32>
    %33 = arith.extui %32 : vector<8x8xi1> to vector<8x8xi32>
    %34 = arith.sitofp %33 : vector<8x8xi32> to vector<8x8xf32>
    %cst_5 = arith.constant dense<0.000000e+00> : vector<8xf32>
    %35 = vector.multi_reduction <add>, %34, %cst_5 [1] : vector<8x8xf32> to vector<8xf32>
    %36 = vector.shape_cast %35 : vector<8xf32> to vector<8x1xf32>
    %c2_i32_6 = arith.constant 2 : i32
    %37 = vector.broadcast %c2_i32_6 : i32 to vector<1x16xi32>
    %38 = arith.cmpi eq, %1, %37 : vector<1x16xi32>
    %39 = arith.extui %38 : vector<1x16xi1> to vector<1x16xi32>
    %40 = arith.sitofp %39 : vector<1x16xi32> to vector<1x16xf32>
    %41 = vector.broadcast %36 : vector<8x1xf32> to vector<8x16xf32>
    %42 = vector.broadcast %40 : vector<1x16xf32> to vector<8x16xf32>
    %43 = arith.mulf %41, %42 : vector<8x16xf32>
    %44 = arith.addf %30, %43 : vector<8x16xf32>
    %c3_i32 = arith.constant 3 : i32
    %45 = vector.broadcast %c3_i32 : i32 to vector<8x8xi32>
    %46 = arith.cmpi eq, %0, %45 : vector<8x8xi32>
    %47 = arith.extui %46 : vector<8x8xi1> to vector<8x8xi32>
    %48 = arith.sitofp %47 : vector<8x8xi32> to vector<8x8xf32>
    %cst_7 = arith.constant dense<0.000000e+00> : vector<8xf32>
    %49 = vector.multi_reduction <add>, %48, %cst_7 [1] : vector<8x8xf32> to vector<8xf32>
    %50 = vector.shape_cast %49 : vector<8xf32> to vector<8x1xf32>
    %c3_i32_8 = arith.constant 3 : i32
    %51 = vector.broadcast %c3_i32_8 : i32 to vector<1x16xi32>
    %52 = arith.cmpi eq, %1, %51 : vector<1x16xi32>
    %53 = arith.extui %52 : vector<1x16xi1> to vector<1x16xi32>
    %54 = arith.sitofp %53 : vector<1x16xi32> to vector<1x16xf32>
    %55 = vector.broadcast %50 : vector<8x1xf32> to vector<8x16xf32>
    %56 = vector.broadcast %54 : vector<1x16xf32> to vector<8x16xf32>
    %57 = arith.mulf %55, %56 : vector<8x16xf32>
    %58 = arith.addf %44, %57 : vector<8x16xf32>
    %c4_i32 = arith.constant 4 : i32
    %59 = vector.broadcast %c4_i32 : i32 to vector<8x8xi32>
    %60 = arith.cmpi eq, %0, %59 : vector<8x8xi32>
    %61 = arith.extui %60 : vector<8x8xi1> to vector<8x8xi32>
    %62 = arith.sitofp %61 : vector<8x8xi32> to vector<8x8xf32>
    %cst_9 = arith.constant dense<0.000000e+00> : vector<8xf32>
    %63 = vector.multi_reduction <add>, %62, %cst_9 [1] : vector<8x8xf32> to vector<8xf32>
    %64 = vector.shape_cast %63 : vector<8xf32> to vector<8x1xf32>
    %c4_i32_10 = arith.constant 4 : i32
    %65 = vector.broadcast %c4_i32_10 : i32 to vector<1x16xi32>
    %66 = arith.cmpi eq, %1, %65 : vector<1x16xi32>
    %67 = arith.extui %66 : vector<1x16xi1> to vector<1x16xi32>
    %68 = arith.sitofp %67 : vector<1x16xi32> to vector<1x16xf32>
    %69 = vector.broadcast %64 : vector<8x1xf32> to vector<8x16xf32>
    %70 = vector.broadcast %68 : vector<1x16xf32> to vector<8x16xf32>
    %71 = arith.mulf %69, %70 : vector<8x16xf32>
    %72 = arith.addf %58, %71 : vector<8x16xf32>
    %c5_i32 = arith.constant 5 : i32
    %73 = vector.broadcast %c5_i32 : i32 to vector<8x8xi32>
    %74 = arith.cmpi eq, %0, %73 : vector<8x8xi32>
    %75 = arith.extui %74 : vector<8x8xi1> to vector<8x8xi32>
    %76 = arith.sitofp %75 : vector<8x8xi32> to vector<8x8xf32>
    %cst_11 = arith.constant dense<0.000000e+00> : vector<8xf32>
    %77 = vector.multi_reduction <add>, %76, %cst_11 [1] : vector<8x8xf32> to vector<8xf32>
    %78 = vector.shape_cast %77 : vector<8xf32> to vector<8x1xf32>
    %c5_i32_12 = arith.constant 5 : i32
    %79 = vector.broadcast %c5_i32_12 : i32 to vector<1x16xi32>
    %80 = arith.cmpi eq, %1, %79 : vector<1x16xi32>
    %81 = arith.extui %80 : vector<1x16xi1> to vector<1x16xi32>
    %82 = arith.sitofp %81 : vector<1x16xi32> to vector<1x16xf32>
    %83 = vector.broadcast %78 : vector<8x1xf32> to vector<8x16xf32>
    %84 = vector.broadcast %82 : vector<1x16xf32> to vector<8x16xf32>
    %85 = arith.mulf %83, %84 : vector<8x16xf32>
    %86 = arith.addf %72, %85 : vector<8x16xf32>
    %c6_i32 = arith.constant 6 : i32
    %87 = vector.broadcast %c6_i32 : i32 to vector<8x8xi32>
    %88 = arith.cmpi eq, %0, %87 : vector<8x8xi32>
    %89 = arith.extui %88 : vector<8x8xi1> to vector<8x8xi32>
    %90 = arith.sitofp %89 : vector<8x8xi32> to vector<8x8xf32>
    %cst_13 = arith.constant dense<0.000000e+00> : vector<8xf32>
    %91 = vector.multi_reduction <add>, %90, %cst_13 [1] : vector<8x8xf32> to vector<8xf32>
    %92 = vector.shape_cast %91 : vector<8xf32> to vector<8x1xf32>
    %c6_i32_14 = arith.constant 6 : i32
    %93 = vector.broadcast %c6_i32_14 : i32 to vector<1x16xi32>
    %94 = arith.cmpi eq, %1, %93 : vector<1x16xi32>
    %95 = arith.extui %94 : vector<1x16xi1> to vector<1x16xi32>
    %96 = arith.sitofp %95 : vector<1x16xi32> to vector<1x16xf32>
    %97 = vector.broadcast %92 : vector<8x1xf32> to vector<8x16xf32>
    %98 = vector.broadcast %96 : vector<1x16xf32> to vector<8x16xf32>
    %99 = arith.mulf %97, %98 : vector<8x16xf32>
    %100 = arith.addf %86, %99 : vector<8x16xf32>
    %c7_i32 = arith.constant 7 : i32
    %101 = vector.broadcast %c7_i32 : i32 to vector<8x8xi32>
    %102 = arith.cmpi eq, %0, %101 : vector<8x8xi32>
    %103 = arith.extui %102 : vector<8x8xi1> to vector<8x8xi32>
    %104 = arith.sitofp %103 : vector<8x8xi32> to vector<8x8xf32>
    %cst_15 = arith.constant dense<0.000000e+00> : vector<8xf32>
    %105 = vector.multi_reduction <add>, %104, %cst_15 [1] : vector<8x8xf32> to vector<8xf32>
    %106 = vector.shape_cast %105 : vector<8xf32> to vector<8x1xf32>
    %c7_i32_16 = arith.constant 7 : i32
    %107 = vector.broadcast %c7_i32_16 : i32 to vector<1x16xi32>
    %108 = arith.cmpi eq, %1, %107 : vector<1x16xi32>
    %109 = arith.extui %108 : vector<1x16xi1> to vector<1x16xi32>
    %110 = arith.sitofp %109 : vector<1x16xi32> to vector<1x16xf32>
    %111 = vector.broadcast %106 : vector<8x1xf32> to vector<8x16xf32>
    %112 = vector.broadcast %110 : vector<1x16xf32> to vector<8x16xf32>
    %113 = arith.mulf %111, %112 : vector<8x16xf32>
    %114 = arith.addf %100, %113 : vector<8x16xf32>
    %c8_i32 = arith.constant 8 : i32
    %115 = vector.broadcast %c8_i32 : i32 to vector<8x8xi32>
    %116 = arith.cmpi eq, %0, %115 : vector<8x8xi32>
    %117 = arith.extui %116 : vector<8x8xi1> to vector<8x8xi32>
    %118 = arith.sitofp %117 : vector<8x8xi32> to vector<8x8xf32>
    %cst_17 = arith.constant dense<0.000000e+00> : vector<8xf32>
    %119 = vector.multi_reduction <add>, %118, %cst_17 [1] : vector<8x8xf32> to vector<8xf32>
    %120 = vector.shape_cast %119 : vector<8xf32> to vector<8x1xf32>
    %c8_i32_18 = arith.constant 8 : i32
    %121 = vector.broadcast %c8_i32_18 : i32 to vector<1x16xi32>
    %122 = arith.cmpi eq, %1, %121 : vector<1x16xi32>
    %123 = arith.extui %122 : vector<1x16xi1> to vector<1x16xi32>
    %124 = arith.sitofp %123 : vector<1x16xi32> to vector<1x16xf32>
    %125 = vector.broadcast %120 : vector<8x1xf32> to vector<8x16xf32>
    %126 = vector.broadcast %124 : vector<1x16xf32> to vector<8x16xf32>
    %127 = arith.mulf %125, %126 : vector<8x16xf32>
    %128 = arith.addf %114, %127 : vector<8x16xf32>
    %c9_i32 = arith.constant 9 : i32
    %129 = vector.broadcast %c9_i32 : i32 to vector<8x8xi32>
    %130 = arith.cmpi eq, %0, %129 : vector<8x8xi32>
    %131 = arith.extui %130 : vector<8x8xi1> to vector<8x8xi32>
    %132 = arith.sitofp %131 : vector<8x8xi32> to vector<8x8xf32>
    %cst_19 = arith.constant dense<0.000000e+00> : vector<8xf32>
    %133 = vector.multi_reduction <add>, %132, %cst_19 [1] : vector<8x8xf32> to vector<8xf32>
    %134 = vector.shape_cast %133 : vector<8xf32> to vector<8x1xf32>
    %c9_i32_20 = arith.constant 9 : i32
    %135 = vector.broadcast %c9_i32_20 : i32 to vector<1x16xi32>
    %136 = arith.cmpi eq, %1, %135 : vector<1x16xi32>
    %137 = arith.extui %136 : vector<1x16xi1> to vector<1x16xi32>
    %138 = arith.sitofp %137 : vector<1x16xi32> to vector<1x16xf32>
    %139 = vector.broadcast %134 : vector<8x1xf32> to vector<8x16xf32>
    %140 = vector.broadcast %138 : vector<1x16xf32> to vector<8x16xf32>
    %141 = arith.mulf %139, %140 : vector<8x16xf32>
    %142 = arith.addf %128, %141 : vector<8x16xf32>
    %c10_i32 = arith.constant 10 : i32
    %143 = vector.broadcast %c10_i32 : i32 to vector<8x8xi32>
    %144 = arith.cmpi eq, %0, %143 : vector<8x8xi32>
    %145 = arith.extui %144 : vector<8x8xi1> to vector<8x8xi32>
    %146 = arith.sitofp %145 : vector<8x8xi32> to vector<8x8xf32>
    %cst_21 = arith.constant dense<0.000000e+00> : vector<8xf32>
    %147 = vector.multi_reduction <add>, %146, %cst_21 [1] : vector<8x8xf32> to vector<8xf32>
    %148 = vector.shape_cast %147 : vector<8xf32> to vector<8x1xf32>
    %c10_i32_22 = arith.constant 10 : i32
    %149 = vector.broadcast %c10_i32_22 : i32 to vector<1x16xi32>
    %150 = arith.cmpi eq, %1, %149 : vector<1x16xi32>
    %151 = arith.extui %150 : vector<1x16xi1> to vector<1x16xi32>
    %152 = arith.sitofp %151 : vector<1x16xi32> to vector<1x16xf32>
    %153 = vector.broadcast %148 : vector<8x1xf32> to vector<8x16xf32>
    %154 = vector.broadcast %152 : vector<1x16xf32> to vector<8x16xf32>
    %155 = arith.mulf %153, %154 : vector<8x16xf32>
    %156 = arith.addf %142, %155 : vector<8x16xf32>
    %c11_i32 = arith.constant 11 : i32
    %157 = vector.broadcast %c11_i32 : i32 to vector<8x8xi32>
    %158 = arith.cmpi eq, %0, %157 : vector<8x8xi32>
    %159 = arith.extui %158 : vector<8x8xi1> to vector<8x8xi32>
    %160 = arith.sitofp %159 : vector<8x8xi32> to vector<8x8xf32>
    %cst_23 = arith.constant dense<0.000000e+00> : vector<8xf32>
    %161 = vector.multi_reduction <add>, %160, %cst_23 [1] : vector<8x8xf32> to vector<8xf32>
    %162 = vector.shape_cast %161 : vector<8xf32> to vector<8x1xf32>
    %c11_i32_24 = arith.constant 11 : i32
    %163 = vector.broadcast %c11_i32_24 : i32 to vector<1x16xi32>
    %164 = arith.cmpi eq, %1, %163 : vector<1x16xi32>
    %165 = arith.extui %164 : vector<1x16xi1> to vector<1x16xi32>
    %166 = arith.sitofp %165 : vector<1x16xi32> to vector<1x16xf32>
    %167 = vector.broadcast %162 : vector<8x1xf32> to vector<8x16xf32>
    %168 = vector.broadcast %166 : vector<1x16xf32> to vector<8x16xf32>
    %169 = arith.mulf %167, %168 : vector<8x16xf32>
    %170 = arith.addf %156, %169 : vector<8x16xf32>
    %c12_i32 = arith.constant 12 : i32
    %171 = vector.broadcast %c12_i32 : i32 to vector<8x8xi32>
    %172 = arith.cmpi eq, %0, %171 : vector<8x8xi32>
    %173 = arith.extui %172 : vector<8x8xi1> to vector<8x8xi32>
    %174 = arith.sitofp %173 : vector<8x8xi32> to vector<8x8xf32>
    %cst_25 = arith.constant dense<0.000000e+00> : vector<8xf32>
    %175 = vector.multi_reduction <add>, %174, %cst_25 [1] : vector<8x8xf32> to vector<8xf32>
    %176 = vector.shape_cast %175 : vector<8xf32> to vector<8x1xf32>
    %c12_i32_26 = arith.constant 12 : i32
    %177 = vector.broadcast %c12_i32_26 : i32 to vector<1x16xi32>
    %178 = arith.cmpi eq, %1, %177 : vector<1x16xi32>
    %179 = arith.extui %178 : vector<1x16xi1> to vector<1x16xi32>
    %180 = arith.sitofp %179 : vector<1x16xi32> to vector<1x16xf32>
    %181 = vector.broadcast %176 : vector<8x1xf32> to vector<8x16xf32>
    %182 = vector.broadcast %180 : vector<1x16xf32> to vector<8x16xf32>
    %183 = arith.mulf %181, %182 : vector<8x16xf32>
    %184 = arith.addf %170, %183 : vector<8x16xf32>
    %c13_i32 = arith.constant 13 : i32
    %185 = vector.broadcast %c13_i32 : i32 to vector<8x8xi32>
    %186 = arith.cmpi eq, %0, %185 : vector<8x8xi32>
    %187 = arith.extui %186 : vector<8x8xi1> to vector<8x8xi32>
    %188 = arith.sitofp %187 : vector<8x8xi32> to vector<8x8xf32>
    %cst_27 = arith.constant dense<0.000000e+00> : vector<8xf32>
    %189 = vector.multi_reduction <add>, %188, %cst_27 [1] : vector<8x8xf32> to vector<8xf32>
    %190 = vector.shape_cast %189 : vector<8xf32> to vector<8x1xf32>
    %c13_i32_28 = arith.constant 13 : i32
    %191 = vector.broadcast %c13_i32_28 : i32 to vector<1x16xi32>
    %192 = arith.cmpi eq, %1, %191 : vector<1x16xi32>
    %193 = arith.extui %192 : vector<1x16xi1> to vector<1x16xi32>
    %194 = arith.sitofp %193 : vector<1x16xi32> to vector<1x16xf32>
    %195 = vector.broadcast %190 : vector<8x1xf32> to vector<8x16xf32>
    %196 = vector.broadcast %194 : vector<1x16xf32> to vector<8x16xf32>
    %197 = arith.mulf %195, %196 : vector<8x16xf32>
    %198 = arith.addf %184, %197 : vector<8x16xf32>
    %c14_i32 = arith.constant 14 : i32
    %199 = vector.broadcast %c14_i32 : i32 to vector<8x8xi32>
    %200 = arith.cmpi eq, %0, %199 : vector<8x8xi32>
    %201 = arith.extui %200 : vector<8x8xi1> to vector<8x8xi32>
    %202 = arith.sitofp %201 : vector<8x8xi32> to vector<8x8xf32>
    %cst_29 = arith.constant dense<0.000000e+00> : vector<8xf32>
    %203 = vector.multi_reduction <add>, %202, %cst_29 [1] : vector<8x8xf32> to vector<8xf32>
    %204 = vector.shape_cast %203 : vector<8xf32> to vector<8x1xf32>
    %c14_i32_30 = arith.constant 14 : i32
    %205 = vector.broadcast %c14_i32_30 : i32 to vector<1x16xi32>
    %206 = arith.cmpi eq, %1, %205 : vector<1x16xi32>
    %207 = arith.extui %206 : vector<1x16xi1> to vector<1x16xi32>
    %208 = arith.sitofp %207 : vector<1x16xi32> to vector<1x16xf32>
    %209 = vector.broadcast %204 : vector<8x1xf32> to vector<8x16xf32>
    %210 = vector.broadcast %208 : vector<1x16xf32> to vector<8x16xf32>
    %211 = arith.mulf %209, %210 : vector<8x16xf32>
    %212 = arith.addf %198, %211 : vector<8x16xf32>
    %c0_31 = arith.constant 0 : index
    %c0_32 = arith.constant 0 : index
    %213 = vector.load %arg2[%c0_31, %c0_32] : memref<16x128xf32, #tpu.memory_space<vmem>>, vector<16x128xf32>
    %cst_33 = arith.constant dense<0.000000e+00> : vector<8x128xf32>
    %214 = tpu.matmul %212, %213, %cst_33 {dimension_numbers = #tpu.dot_dimension_numbers<[1], [0], [0], [1], [0, 0, 1, 1], [], []>} : vector<8x16xf32>, vector<16x128xf32>, vector<8x128xf32> -> vector<8x128xf32>
    %c0_34 = arith.constant 0 : index
    %c0_35 = arith.constant 0 : index
    %215 = vector.load %arg3[%c0_34, %c0_35] : memref<1x128xf32, #tpu.memory_space<vmem>>, vector<1x128xf32>
    %216 = vector.broadcast %215 : vector<1x128xf32> to vector<8x128xf32>
    %217 = arith.addf %214, %216 : vector<8x128xf32>
    %cst_36 = arith.constant 0.000000e+00 : f32
    %218 = vector.broadcast %cst_36 : f32 to vector<8x128xf32>
    %219 = arith.maximumf %217, %218 : vector<8x128xf32>
    %c0_37 = arith.constant 0 : index
    %c0_38 = arith.constant 0 : index
    %220 = vector.load %arg4[%c0_37, %c0_38] : memref<128x10xf32, #tpu.memory_space<vmem>>, vector<128x10xf32>
    %cst_39 = arith.constant dense<0.000000e+00> : vector<8x10xf32>
    %221 = tpu.matmul %219, %220, %cst_39 {dimension_numbers = #tpu.dot_dimension_numbers<[1], [0], [0], [1], [0, 0, 1, 1], [], []>} : vector<8x128xf32>, vector<128x10xf32>, vector<8x10xf32> -> vector<8x10xf32>
    %c0_40 = arith.constant 0 : index
    %c0_41 = arith.constant 0 : index
    %222 = vector.load %arg5[%c0_40, %c0_41] : memref<1x10xf32, #tpu.memory_space<vmem>>, vector<1x10xf32>
    %223 = vector.broadcast %222 : vector<1x10xf32> to vector<8x10xf32>
    %224 = arith.addf %221, %223 : vector<8x10xf32>
    %225 = arith.mulf %224, %224 : vector<8x10xf32>
    %cst_42 = arith.constant dense<0.000000e+00> : vector<8xf32>
    %226 = vector.multi_reduction <add>, %225, %cst_42 [1] : vector<8x10xf32> to vector<8xf32>
    %227 = vector.shape_cast %226 : vector<8xf32> to vector<8x1xf32>
    %cst_43 = arith.constant 1.000000e-24 : f32
    %228 = vector.broadcast %cst_43 : f32 to vector<8x1xf32>
    %229 = arith.maximumf %227, %228 : vector<8x1xf32>
    %230 = math.rsqrt %229 : vector<8x1xf32>
    %231 = vector.broadcast %230 : vector<8x1xf32> to vector<8x10xf32>
    %232 = arith.mulf %224, %231 : vector<8x10xf32>
    %c0_44 = arith.constant 0 : index
    %c0_45 = arith.constant 0 : index
    %233 = vector.load %arg6[%c0_44, %c0_45] : memref<8x10xf32, #tpu.memory_space<vmem>>, vector<8x10xf32>
    tpu.vector_store %arg6[%c0_44, %c0_45], %232 {strides = array<i32>} : memref<8x10xf32, #tpu.memory_space<vmem>>, vector<8x10xf32>,
    return
  }
  func.func @transform_0(%arg0: i32) -> (i32, i32) {
    %c0_i32 = arith.constant 0 : i32
    %c0_i32_0 = arith.constant 0 : i32
    return %arg0, %c0_i32 : i32, i32
  }
  func.func @transform_1(%arg0: i32) -> (i32, i32) {
    %c0_i32 = arith.constant 0 : i32
    %c0_i32_0 = arith.constant 0 : i32
    %c0_i32_1 = arith.constant 0 : i32
    return %c0_i32, %c0_i32_0 : i32, i32
  }
  func.func @transform_2(%arg0: i32) -> (i32, i32) {
    %c0_i32 = arith.constant 0 : i32
    %c0_i32_0 = arith.constant 0 : i32
    %c0_i32_1 = arith.constant 0 : i32
    return %c0_i32, %c0_i32_0 : i32, i32
  }
  func.func @transform_3(%arg0: i32) -> (i32, i32) {
    %c0_i32 = arith.constant 0 : i32
    %c0_i32_0 = arith.constant 0 : i32
    %c0_i32_1 = arith.constant 0 : i32
    return %c0_i32, %c0_i32_0 : i32, i32
  }
  func.func @transform_4(%arg0: i32) -> (i32, i32) {
    %c0_i32 = arith.constant 0 : i32
    %c0_i32_0 = arith.constant 0 : i32
    %c0_i32_1 = arith.constant 0 : i32
    return %c0_i32, %c0_i32_0 : i32, i32
  }
  func.func @transform_5(%arg0: i32) -> (i32, i32) {
    %c0_i32 = arith.constant 0 : i32
    %c0_i32_0 = arith.constant 0 : i32
    return %arg0, %c0_i32 : i32, i32
  }
}

</mosaic_0001>

<bundles_post_ra>
// kernel: tpu_custom_call.1
= control target key start
LH: loop header
LB: loop body
LE: loop exit
PB: predicated region body
PF: predicated region fallthrough
CT: control target
= control target key end

     0   :  { %vm27_vm0 = vcmask 64512   ;;  %s715_s0 = inlined_call_operand.vmem [shape: s32[8,8], index: 0, kind: input, shape index: {}]   ;;  %s716_s1 = inlined_call_operand.vmem [shape: f32[16,128], index: 1, kind: input, shape index: {}]   ;;  %s717_s2 = inlined_call_operand.vmem [shape: f32[1,128], index: 2, kind: input, shape index: {}]   ;;  %s718_s3 = inlined_call_operand.vmem [shape: f32[128,10], index: 3, kind: input, shape index: {}]   ;;  %s719_s4 = inlined_call_operand.vmem [shape: f32[1,10], index: 4, kind: input, shape index: {}]   ;;  %s720_s5 = inlined_call_operand.hbm [shape: f32[8,10], index: 5, kind: output, shape index: {}]  }
   0x1   :  { %v21_v0 = vld [vmem:[%s715_s0] sm:$0xff] }
   0x2   :  { %10 = vsyncpa [#allocation3], 0  ;;  %vm24_vm1 = vcmp.eq.s32.totalorder %v21_v0, 0  ;;  %vm47_vm2 = vcmp.eq.s32.totalorder %v21_v0, 2  ;;  %vm36_vm3 = vcmp.eq.s32.totalorder %v21_v0, 1  ;;  %vm58_vm4 = vcmp.eq.s32.totalorder %v21_v0, 3 }
   0x3   :  { %v542_v1 = vmov 0.0   ;;  %vm69_vm5 = vcmp.eq.s32.totalorder %v21_v0, 4  ;;  %vm80_vm6 = vcmp.eq.s32.totalorder %v21_v0, 5  ;;  %vm91_vm7 = vcmp.eq.s32.totalorder %v21_v0, 6  ;;  %v190_v32 = vld [vmem:[%s716_s1] sm:$0xff]  ;;  %v191_v33 = vld [vmem:[%s716_s1 + $0x8] sm:$0xff] }
   0x4   :  { %v390_v2 = vsel %vm24_vm1, 1.0, %v542_v1  ;;  %v394_v3 = vsel %vm47_vm2, 1.0, %v542_v1  ;;  %v392_v4 = vsel %vm36_vm3, 1.0, %v542_v1  ;;  %v396_v5 = vsel %vm58_vm4, 1.0, %v542_v1  ;;  %v274_v36 = vld [vmem:[%s718_s3] sm:$0xff]  ;;  %v275_v37 = vld [vmem:[%s718_s3 + $0x8] sm:$0xff] }
   0x5   :  { %v28_v6 = vsel %vm27_vm0, %v390_v2, 0.0  ;;  %v50_v7 = vsel %vm27_vm0, %v394_v3, 0.0  ;;  %v39_v8 = vsel %vm27_vm0, %v392_v4, 0.0  ;;  %v61_v9 = vsel %vm27_vm0, %v396_v5, 0.0  ;;  %v276_v38 = vld [vmem:[%s718_s3 + $0x10] sm:$0xff]  ;;  %v277_v40 = vld [vmem:[%s718_s3 + $0x18] sm:$0xff] }
   0x6   :  { %29 = vadd.xlane.f32.xlu0 %v28_v6  ;;  %51 = vadd.xlane.f32.xlu1 %v50_v7  ;;  %v398_v10 = vsel %vm69_vm5, 1.0, %v542_v1  ;;  %v400_v11 = vsel %vm80_vm6, 1.0, %v542_v1  ;;  %vm102_vm8 = vcmp.eq.s32.totalorder %v21_v0, 7  ;;  %v402_v14 = vsel %vm91_vm7, 1.0, %v542_v1  ;;  %v278_v42 = vld [vmem:[%s718_s3 + $0x20] sm:$0xff]  ;;  %v279_v43 = vld [vmem:[%s718_s3 + $0x28] sm:$0xff] }
   0x7   :  { %v72_v12 = vsel %vm27_vm0, %v398_v10, 0.0  ;;  %v83_v13 = vsel %vm27_vm0, %v400_v11, 0.0  ;;  %v404_v15 = vsel %vm102_vm8, 1.0, %v542_v1  ;;  %vm113_vm9 = vcmp.eq.s32.totalorder %v21_v0, 8  ;;  %v280_v45 = vld [vmem:[%s718_s3 + $0x30] sm:$0xff]  ;;  %v281_v46 = vld [vmem:[%s718_s3 + $0x38] sm:$0xff] }
   0x8   :  { %vm124_vm10 = vcmp.eq.s32.totalorder %v21_v0, 9  ;;  %v94_v16 = vsel %vm27_vm0, %v402_v14, 0.0  ;;  %v105_v17 = vsel %vm27_vm0, %v404_v15, 0.0  ;;  %v406_v18 = vsel %vm113_vm9, 1.0, %v542_v1  ;;  %v282_v48 = vld [vmem:[%s718_s3 + $0x40] sm:$0xff]  ;;  %v283_v49 = vld [vmem:[%s718_s3 + $0x48] sm:$0xff] }
   0x9   :  { %v408_v19 = vsel %vm124_vm10, 1.0, %v542_v1  ;;  %vm135_vm11 = vcmp.eq.s32.totalorder %v21_v0, 10  ;;  %vm146_vm12 = vcmp.eq.s32.totalorder %v21_v0, 11  ;;  %v116_v20 = vsel %vm27_vm0, %v406_v18, 0.0  ;;  %v284_v51 = vld [vmem:[%s718_s3 + $0x50] sm:$0xff]  ;;  %v285_v52 = vld [vmem:[%s718_s3 + $0x58] sm:$0xff] }
   0xa   :  { %40 = vadd.xlane.f32.xlu0 %v39_v8  ;;  %62 = vadd.xlane.f32.xlu1 %v61_v9  ;;  %v127_v21 = vsel %vm27_vm0, %v408_v19, 0.0  ;;  %v410_v22 = vsel %vm135_vm11, 1.0, %v542_v1  ;;  %v412_v23 = vsel %vm146_vm12, 1.0, %v542_v1  ;;  %vm157_vm13 = vcmp.eq.s32.totalorder %v21_v0, 12  ;;  %v286_v54 = vld [vmem:[%s718_s3 + $0x60] sm:$0xff]  ;;  %v287_v55 = vld [vmem:[%s718_s3 + $0x68] sm:$0xff] }
   0xb   :  { %vm168_vm14 = vcmp.eq.s32.totalorder %v21_v0, 13  ;;  %v138_v24 = vsel %vm27_vm0, %v410_v22, 0.0  ;;  %v149_v25 = vsel %vm27_vm0, %v412_v23, 0.0  ;;  %v414_v26 = vsel %vm157_vm13, 1.0, %v542_v1 }
   0xc   :  { %v416_v27 = vsel %vm168_vm14, 1.0, %v542_v1  ;;  %vm179_vm15 = vcmp.eq.s32.totalorder %v21_v0, 14  ;;  %v160_v28 = vsel %vm27_vm0, %v414_v26, 0.0  ;;  %v486_v34 = vpack.c.bf16 %v191_v33, %v190_v32 }
   0xd   :  { %v171_v29 = vsel %vm27_vm0, %v416_v27, 0.0  ;;  %v418_v30 = vsel %vm179_vm15, 1.0, %v542_v1  ;;  %v543_v35 = vmov 0.0|0.0   ;;  %vm544_vm1 = vmmov 0  }
   0xe   :  { %73 = vadd.xlane.f32.xlu0 %v72_v12  ;;  %84 = vadd.xlane.f32.xlu1 %v83_v13  ;;  %v182_v31 = vsel %vm27_vm0, %v418_v30, 0.0  ;;  %v489_v39 = vpack.c.bf16 %v275_v37, %v274_v36  ;;  %v492_v41 = vpack.c.bf16 %v277_v40, %v276_v38  ;;  %v495_v44 = vpack.c.bf16 %v279_v43, %v278_v42 }
   0xf   :  { %485 = vmatprep.subr.bf16.mxu0 %v543_v35  ;;  %488 = vmatprep.subr.bf16.mxu1 %v543_v35  ;;  %v498_v47 = vpack.c.bf16 %v281_v46, %v280_v45  ;;  %v501_v50 = vpack.c.bf16 %v283_v49, %v282_v48  ;;  %v504_v53 = vpack.c.bf16 %v285_v52, %v284_v51  ;;  %v22_v57 = vlaneseq }
  0x10   :  { %487 = vmatpush3.bf16.msra.mxu0 %v486_v34  ;;  %447 = vmatprep.mubr.msk.f32.mxu0 %vm544_vm1, %v542_v1  ;;  %v507_v56 = vpack.c.bf16 %v287_v55, %v286_v54  ;;  %v288_v55 = vld [vmem:[%s718_s3 + $0x70] sm:$0xff] }
  0x11   :  { %482 = vmatprep.mubr.msk.f32.mxu1 %vm544_vm1, %v542_v1  ;;  %490 = vmatpush3.bf16.msra.mxu1 %v489_v39  ;;  %v659_v58 = vand.u32 127, %v22_v57  ;;  %vm199_vm1 = vcmask 130048  }
  0x12   :  { %95 = vadd.xlane.f32.xlu0 %v94_v16  ;;  %106 = vadd.xlane.f32.xlu1 %v105_v17 }
  0x13   :  { %491 = vmatprep.subr.bf16.mxu1 %v543_v35  ;;  %vm31_vm0 = vcmp.eq.s32.totalorder %v659_v58, 0  ;;  %vm42_vm2 = vcmp.eq.s32.totalorder %v659_v58, 1  ;;  %vm53_vm3 = vcmp.eq.s32.totalorder %v659_v58, 2  ;;  %vm64_vm4 = vcmp.eq.s32.totalorder %v659_v58, 3 }
  0x14   :  { %v391_v61 = vsel %vm31_vm0, 1.0, %v542_v1  ;;  %v393_v62 = vsel %vm42_vm2, 1.0, %v542_v1  ;;  %vm75_vm5 = vcmp.eq.s32.totalorder %v659_v58, 4  ;;  %v395_v63 = vsel %vm53_vm3, 1.0, %v542_v1 }
  0x15   :  { %493 = vmatpush3.bf16.msra.mxu1 %v492_v41  ;;  %v397_v2 = vsel %vm64_vm4, 1.0, %v542_v1  ;;  %vm86_vm6 = vcmp.eq.s32.totalorder %v659_v58, 5  ;;  %v399_v6 = vsel %vm75_vm5, 1.0, %v542_v1  ;;  %vm97_vm7 = vcmp.eq.s32.totalorder %v659_v58, 6 }
  0x16   :  { %117 = vadd.xlane.f32.xlu0 %v116_v20  ;;  %128 = vadd.xlane.f32.xlu1 %v127_v21  ;;  %v401_v11 = vsel %vm86_vm6, 1.0, %v542_v1  ;;  %vm108_vm8 = vcmp.eq.s32.totalorder %v659_v58, 7  ;;  %v403_v15 = vsel %vm97_vm7, 1.0, %v542_v1  ;;  %vm119_vm9 = vcmp.eq.s32.totalorder %v659_v58, 8 }
  0x17   :  { %494 = vmatprep.subr.bf16.mxu1 %v543_v35  ;;  %v405_v19 = vsel %vm108_vm8, 1.0, %v542_v1  ;;  %vm130_vm10 = vcmp.eq.s32.totalorder %v659_v58, 9  ;;  %v407_v23 = vsel %vm119_vm9, 1.0, %v542_v1  ;;  %vm141_vm11 = vcmp.eq.s32.totalorder %v659_v58, 10 }
  0x18   :  { %v409_v27 = vsel %vm130_vm10, 1.0, %v542_v1  ;;  %vm152_vm12 = vcmp.eq.s32.totalorder %v659_v58, 11  ;;  %vm163_vm13 = vcmp.eq.s32.totalorder %v659_v58, 12  ;;  %vm174_vm14 = vcmp.eq.s32.totalorder %v659_v58, 13 }
  0x19   :  { %496 = vmatpush3.bf16.msra.mxu1 %v495_v44  ;;  %v415_v39 = vsel %vm163_vm13, 1.0, %v542_v1  ;;  %vm185_vm15 = vcmp.eq.s32.totalorder %v659_v58, 14  ;;  %v417_v43 = vsel %vm174_vm14, 1.0, %v542_v1  ;;  %vm368_vm0 = vcmask 80896  }
  0x1a   :  { %139 = vadd.xlane.f32.xlu0 %v138_v24  ;;  %150 = vadd.xlane.f32.xlu1 %v149_v25 }
  0x1b   :  { %497 = vmatprep.subr.bf16.mxu1 %v543_v35 }
  0x1d   :  { %499 = vmatpush3.bf16.msra.mxu1 %v498_v47  ;;  %v419_v47 = vsel %vm185_vm15, 1.0, %v542_v1 }
  0x1e   :  { %161 = vadd.xlane.f32.xlu0 %v160_v28  ;;  %172 = vadd.xlane.f32.xlu1 %v171_v29 }
  0x1f   :  { %500 = vmatprep.subr.bf16.mxu1 %v543_v35 }
  0x21   :  { %502 = vmatpush3.bf16.msra.mxu1 %v501_v50 }
  0x22   :  { %183 = vadd.xlane.f32.xlu0 %v182_v31  ;;  %503 = vmatprep.subr.bf16.mxu1 %v543_v35  ;;  %v411_v31 = vsel %vm141_vm11, 1.0, %v542_v1 }
  0x25   :  { %505 = vmatpush3.bf16.msra.mxu1 %v504_v53 }
  0x26   :  { %506 = vmatprep.subr.bf16.mxu1 %v543_v35 }
  0x29   :  { %508 = vmatpush3.bf16.msra.mxu1 %v507_v56  ;;  %v289_v56 = vld [vmem:[%s718_s3 + $0x78] sm:$0xff] }
  0x2a   :  { %509 = vmatprep.subr.bf16.mxu1 %v543_v35  ;;  %v413_v35 = vsel %vm152_vm12, 1.0, %v542_v1  ;;  %v510_v57 = vpack.c.bf16 %v289_v56, %v288_v55  ;;  %v420_v1 = vld [vmem:[%s717_s2] ss:$0 sm:$0xff]  ;;  %s545_s2 = smov [#allocation2]  }
  0x2b   :  { %s382_s3 = sshll.u32 %s545_s2, 4  ;;  %s383_s3 = int_to_ptr.vmem [resolvable:$true] %s382_s3 }
  0x2c   :  { %s518_s6 = scalar_lea.vmem %s383_s3, 128  ;;  %p523_p1 = scmp.lt.s32.totalorder %s383_s3, %s383_s3 }
  0x2d   :  { %511 = vmatpush3.bf16.msra.mxu1 %v510_v57  ;;  %p519_p0 = scmp.ne.s32.totalorder %s383_s3, %s518_s6  ;;  %p524_p2 = scmp.lt.s32.totalorder %s518_s6, %s518_s6 }
  0x2f   :  { %p525_p3 = por %p524_p2, %p523_p1 }
  0x31   :  { %p526_p4 = pnand %p525_p3, %p519_p0 }
  0x93   :  { %v30_v59 = vpop.xlane.xlu0 %29  ;;  %v52_v60 = vpop.xlane.xlu1 %51 }
  0x94   :  { %v34_v4 = vmul.f32 %v391_v61, %v30_v59  ;;  %v56_v7 = vmul.f32 %v395_v63, %v52_v60 }
  0x97   :  { %v41_v0 = vpop.xlane.xlu0 %40  ;;  %v63_v3 = vpop.xlane.xlu1 %62 }
  0x98   :  { %v45_v5 = vmul.f32 %v393_v62, %v41_v0  ;;  %v67_v9 = vmul.f32 %v397_v2, %v63_v3  ;;  %v422_v62 = vld [vmem:[%s719_s4] ss:$0 sm:$0xff] }
  0x9a   :  { %v46_v8 = vadd.f32 %v45_v5, %v34_v4 }
  0x9b   :  { %v74_v10 = vpop.xlane.xlu0 %73  ;;  %v85_v12 = vpop.xlane.xlu1 %84 }
  0x9c   :  { %v57_v13 = vadd.f32 %v56_v7, %v46_v8  ;;  %v78_v14 = vmul.f32 %v399_v6, %v74_v10  ;;  %v89_v17 = vmul.f32 %v401_v11, %v85_v12 }
  0x9e   :  { %v68_v16 = vadd.f32 %v67_v9, %v57_v13 }
  0x9f   :  { %v96_v18 = vpop.xlane.xlu0 %95  ;;  %v107_v20 = vpop.xlane.xlu1 %106 }
  0xa0   :  { %v79_v21 = vadd.f32 %v78_v14, %v68_v16  ;;  %v100_v22 = vmul.f32 %v403_v15, %v96_v18  ;;  %v111_v25 = vmul.f32 %v405_v19, %v107_v20 }
  0xa2   :  { %v90_v24 = vadd.f32 %v89_v17, %v79_v21 }
  0xa3   :  { %v118_v26 = vpop.xlane.xlu0 %117  ;;  %v129_v28 = vpop.xlane.xlu1 %128 }
  0xa4   :  { %v101_v29 = vadd.f32 %v100_v22, %v90_v24  ;;  %v122_v30 = vmul.f32 %v407_v23, %v118_v26  ;;  %v133_v33 = vmul.f32 %v409_v27, %v129_v28 }
  0xa6   :  { %v112_v32 = vadd.f32 %v111_v25, %v101_v29 }
  0xa7   :  { %v140_v34 = vpop.xlane.xlu0 %139  ;;  %v151_v36 = vpop.xlane.xlu1 %150 }
  0xa8   :  { %v123_v37 = vadd.f32 %v122_v30, %v112_v32  ;;  %v144_v38 = vmul.f32 %v411_v31, %v140_v34  ;;  %v155_v41 = vmul.f32 %v413_v35, %v151_v36 }
  0xaa   :  { %v134_v40 = vadd.f32 %v133_v33, %v123_v37 }
  0xab   :  { %v162_v42 = vpop.xlane.xlu0 %161  ;;  %v173_v44 = vpop.xlane.xlu1 %172 }
  0xac   :  { %v145_v45 = vadd.f32 %v144_v38, %v134_v40  ;;  %v166_v46 = vmul.f32 %v415_v39, %v162_v42  ;;  %v177_v49 = vmul.f32 %v417_v43, %v173_v44 }
  0xae   :  { %v156_v48 = vadd.f32 %v155_v41, %v145_v45 }
  0xaf   :  { %v184_v50 = vpop.xlane.xlu0 %183 }
  0xb0   :  { %v167_v51 = vadd.f32 %v166_v46, %v156_v48  ;;  %v188_v52 = vmul.f32 %v419_v47, %v184_v50 }
  0xb2   :  { %v178_v53 = vadd.f32 %v177_v49, %v167_v51 }
  0xb4   :  { %v189_v54 = vadd.f32 %v188_v52, %v178_v53 }
  0xb6   :  { %448 = vmatmul.mubr.msk.f32.vlgmr.msra.gmra.mrb[0].mxu0 %vm199_vm1, %v189_v54 }
 0x189   :  { %v269_v58 = vpop.f32.mrb[0].mxu0 }
 0x18a   :  { %v270_v59 = vadd.f32 %v420_v1, %v269_v58  ;;  %v449_v60 = vpop.f32.mrb[1].mxu0 }
 0x18c   :  { %v273_v61 = vmax.f32 %v270_v59, 0.0 }
 0x18e   :  { %483 = vmatmul.mubr.f32.vlgmr.msra.gmra.mrb[0].mxu1 %v273_v61 }
 0x261   :  { %v363_v63 = vpop.f32.mrb[0].mxu1 }
 0x262   :  { %v364_v0 = vadd.f32 %v422_v62, %v363_v63  ;;  %v484_v2 = vpop.f32.mrb[1].mxu1 }
 0x264   :  { %v367_v3 = vmul.f32 %v364_v0, %v364_v0 }
 0x266   :  { %v369_v4 = vsel %vm368_vm0, %v367_v3, 0.0 }
 0x267   :  { %370 = vadd.xlane.f32.xlu1 %v369_v4 }
 0x2f4   :  { %v371_v5 = vpop.xlane.xlu1 %370 }
 0x2f5   :  { %v372_v6 = vmax.f32 %v371_v5, 1e-24 }
 0x2f7   :  { %516 = vrsqrt.f32 %v372_v6 }
 0x301   :  { %v517_v7 = vpop.eup %516 }
 0x302   :  { %v374_v8 = vmul.f32 %v517_v7, %v364_v0 }
 0x304   :  { %375 = vst.msk [vmem:[#allocation2] sm:$0xff] %vm368_vm0, %v374_v8 }
 0x305   :  { %529 = shalt.err (!%p526_p4)
}
 0x306   :  { %s530_s8 = scalar_lea.hbm %s720_s5, 128 }
 0x307   :  { %p531_p5 = scmp.ne.s32.totalorder %s720_s5, %s530_s8  ;;  %p534_p6 = scmp.lt.u32.totalorder %s530_s8, %s720_s5 }
 0x309   :  { %p536_p7 = pnand %p534_p6, %p531_p5 }
 0x30b   :  { %539 = shalt.err (!%p536_p7)
}
 0x30c   :  { %385 = dma.vmem_to_hbm [thread:$0]  %s383_s3, 128, %s720_s5, [#allocation3]  }
 0x30d   :  { %540 = dma.done.wait [#allocation3], 128  }
 0x30e   :  { %541 = vsyncadd [#allocation3], 4294967168 }
 0x30f   :  { %389 = vsyncpa [#allocation3], 1 }

</bundles_post_ra>
